<compile_context>
chip_gen: v5e
topology: v5e:2x2
jax: 0.10.0
libtpu: 0.0.40
codegen_flags: <defaults>
</compile_context>

<pallas_src>
import math
import jax
import jax.numpy as jnp
from jax.experimental import pallas as pl
from jax.experimental.pallas import tpu as pltpu

N_FFT = 512
WIN_LENGTH = 128
HOP_LENGTH = 50
N_FREQ = N_FFT // 2 + 1                      # 257 one-sided STFT bins
F_CROP = int(20 / 100 * N_FREQ + 2)          # 53  (same crop as image[:, :, :int(0.2*h+2), :])
F_HALF = 64                                  # lane-aligned freq tile per half (>= F_CROP)
K_PAD = 64                                   # hop rows zero-padded 50 -> 64 for aligned K
TT_MAX = 1024                                # frames per grid step (cap)


def _round_up(x, m):
    return (x + m - 1) // m * m


def _spectrogram_kernel(rows_ref, nxt_ref, w_ref, out_ref, buf_ref):
    """Frames tile j of one (b,c) waveform -> magnitude tile, via 3 hop-decomposed matmuls.

    rows_ref: (1, TT, 50) bf16   hop rows j*TT .. j*TT+TT-1
    nxt_ref : (1, 8, 50)  bf16   hop rows j*TT+TT .. +7 (first rows of the next tile)
    w_ref   : (3, 64, 128) f32   windowed DFT basis pieces [cos64 | sin64], 1e-3 folded in
    out_ref : (1, TT, 64) f32    magnitude (clipped), 53 real bins + 11 zero lanes
    buf_ref : (TT+8, 64)  f32    staging scratch (rows widened to 64 zero-padded lanes)
    """
    tt = out_ref.shape[1]

    # Stage hop rows as f32 with explicit zero lane padding (scratch persists across steps,
    # re-zeroing every step is a handful of vreg stores and keeps megacore sharding safe).
    buf_ref[...] = jnp.zeros_like(buf_ref)
    buf_ref[0:tt, 0:HOP_LENGTH] = rows_ref[0].astype(jnp.float32)
    buf_ref[tt:tt + 8, 0:HOP_LENGTH] = nxt_ref[0].astype(jnp.float32)
    rows = buf_ref[...]                                            # (TT+8, 64)

    # frame[t, m] = rows[t, m] (m<50) | rows[t+1, m-50] (50<=m<100) | rows[t+2, m-100] (m>=100)
    y = jnp.dot(rows[0:tt], w_ref[0], preferred_element_type=jnp.float32)          # (TT, 128)
    y = y + jnp.dot(rows[1:tt + 1], w_ref[1], preferred_element_type=jnp.float32)
    y = y + jnp.dot(rows[2:tt + 2], w_ref[2], preferred_element_type=jnp.float32)

    re = y[:, :F_HALF]                                             # lane-aligned slice (free)
    im = y[:, F_HALF:]
    mag = jnp.sqrt(re * re + im * im)                              # power=1 magnitude, *1e-3
    out_ref[0] = jnp.minimum(mag, 10.0)                            # clip(.,0,1e4)/1e3; mag>=0


def _dft_basis_pieces():
    """Hann(128)-windowed DFT basis, split into the three hop-50 pieces.

    Row m of the full 128-row basis corresponds to sample n = m + (512-128)//2 of the n_fft
    frame (only the middle 128 samples see a non-zero window); the 1/1000 post-scale is
    folded in. Returns (3, 64, 128) f32: piece p holds rows [50p, 50p+50) (piece 2: 28 rows),
    zero-padded to 64 contraction rows; columns are [cos(53 bins)+0pad | sin(53 bins)+0pad].
    """
    m = jnp.arange(WIN_LENGTH, dtype=jnp.float32)
    n = m + (N_FFT - WIN_LENGTH) // 2                                   # 192..319
    k = jnp.arange(F_CROP, dtype=jnp.float32)[None, :]                  # only bins we keep
    ang = 2.0 * math.pi * n[:, None] * k / N_FFT
    win = 0.5 * (1.0 - jnp.cos(2.0 * math.pi * m / WIN_LENGTH))         # periodic hann(128)
    wscale = (win * 1e-3)[:, None]                                      # fold /1000 into basis
    cos_m = jnp.cos(ang) * wscale                                       # (128, 53)
    sin_m = jnp.sin(ang) * wscale                                       # sign irrelevant for |.|

    w_full = jnp.zeros((WIN_LENGTH, 2 * F_HALF), jnp.float32)           # (128, 128)
    w_full = w_full.at[:, :F_CROP].set(cos_m)
    w_full = w_full.at[:, F_HALF:F_HALF + F_CROP].set(sin_m)

    pieces = jnp.zeros((3, K_PAD, 2 * F_HALF), jnp.float32)             # (3, 64, 128)
    pieces = pieces.at[0, 0:HOP_LENGTH].set(w_full[0:HOP_LENGTH])
    pieces = pieces.at[1, 0:HOP_LENGTH].set(w_full[HOP_LENGTH:2 * HOP_LENGTH])
    pieces = pieces.at[2, 0:WIN_LENGTH - 2 * HOP_LENGTH].set(w_full[2 * HOP_LENGTH:WIN_LENGTH])
    return pieces


@jax.jit
def transform(x):
    """x: (B, C, L) waveform -> (B, C, 53, T) cropped magnitude spectrogram (PyTorch forward)."""
    B, C, L = x.shape
    pad = WIN_LENGTH // 2
    # centered-window equivalence (reflect pad 64 == middle 128 samples of the n_fft=512 frame
    # under reflect pad 256) needs L >= 65, as does torch's reflect padding itself.
    assert L >= pad + 1, "waveform too short for centered STFT equivalence"

    T = 1 + L // HOP_LENGTH
    n_bc = B * C

    # Adaptive frames-per-step tile; keep >= 2 grid steps when possible (v7x has 2 TensorCores).
    tt = min(TT_MAX, _round_up(T, 8))
    if n_bc * pl.cdiv(T, tt) < 2:
        tt = max(8, _round_up(pl.cdiv(T, 2), 8))
    nt = pl.cdiv(T, tt)
    t_pad = nt * tt
    nr = (nt + 1) * tt                       # hop rows, incl. slack for the "next rows" block

    # --- glue (plain JAX, O(waveform bytes)): reflect pad, bf16 cast, free reshape to hop rows.
    xp = jnp.pad(x.astype(jnp.bfloat16), ((0, 0), (0, 0), (pad, pad)), mode="reflect")
    xp = jnp.pad(xp, ((0, 0), (0, 0), (0, nr * HOP_LENGTH - (L + 2 * pad))))
    rows = xp.reshape(n_bc, nr, HOP_LENGTH)                              # contiguous -> free

    w = _dft_basis_pieces()

    # --- Pallas hot path ---
    out = pl.pallas_call(
        _spectrogram_kernel,
        out_shape=jax.ShapeDtypeStruct((n_bc, t_pad, F_HALF), jnp.float32),
        grid_spec=pltpu.PrefetchScalarGridSpec(
            num_scalar_prefetch=0,
            grid=(n_bc, nt),
            in_specs=[
                # current tile's hop rows (contiguous chunk of the waveform)
                pl.BlockSpec((1, tt, HOP_LENGTH), lambda bc, j: (bc, j, 0)),
                # first 8 hop rows of the next tile (same array, tiny extra DMA)
                pl.BlockSpec((1, 8, HOP_LENGTH), lambda bc, j: (bc, (j + 1) * (tt // 8), 0)),
                # DFT basis: constant block index -> stays resident in VMEM across steps
                pl.BlockSpec((3, K_PAD, 2 * F_HALF), lambda bc, j: (0, 0, 0)),
            ],
            out_specs=pl.BlockSpec((1, tt, F_HALF), lambda bc, j: (bc, j, 0)),
            scratch_shapes=[pltpu.VMEM((tt + 8, K_PAD), jnp.float32)],
        ),
        compiler_params=pltpu.CompilerParams(
            dimension_semantics=("parallel", "parallel")),
    )(rows, rows, w)

    # TODO(synk): emit (freq, time) tiles directly from the kernel (in-kernel transpose of the
    # (TT, 64) magnitude) so this crop+transpose pass disappears for the multi-tile case.
    spec = out.reshape(B, C, t_pad, F_HALF)[:, :, :T, :F_CROP]
    return jnp.transpose(spec, (0, 1, 3, 2))                 # NCHW: (B, C, freq=53, time=T)


def _reference(x):
    """Pure-JAX f32 reference of the PyTorch forward (for a loose numerical sanity check)."""
    B, C, L = x.shape
    pad = N_FFT // 2
    xp = jnp.pad(x, ((0, 0), (0, 0), (pad, pad)), mode="reflect")
    T = 1 + L // HOP_LENGTH
    idx = jnp.arange(T)[:, None] * HOP_LENGTH + jnp.arange(N_FFT)[None, :]
    frames = xp[:, :, idx].astype(jnp.float32)                          # (B, C, T, 512)
    m = jnp.arange(WIN_LENGTH, dtype=jnp.float32)
    win = 0.5 * (1.0 - jnp.cos(2.0 * math.pi * m / WIN_LENGTH))
    lo = (N_FFT - WIN_LENGTH) // 2
    win_full = jnp.zeros((N_FFT,), jnp.float32).at[lo:lo + WIN_LENGTH].set(win)
    mag = jnp.abs(jnp.fft.rfft(frames * win_full, axis=-1))             # (B, C, T, 257)
    img = jnp.clip(mag, 0.0, 10000.0) / 1000.0
    img = jnp.transpose(img, (0, 1, 3, 2))                              # (B, C, 257, T)
    return img[:, :, :F_CROP, :]


if __name__ == "__main__":
    key = jax.random.PRNGKey(0)
    # small waveform batch: batch=2, channels=2, samples=800 -> T = 1 + 800//50 = 17 frames
    x = jax.random.normal(key, (2, 2, 800), dtype=jnp.float32)

    y = transform(x)
    jax.block_until_ready(y)

    assert y.shape == (2, 2, F_CROP, 1 + 800 // HOP_LENGTH), y.shape
    assert y.dtype == jnp.float32

    # loose sanity check vs f32 reference (waveform is bf16-rounded -> <~0.2% relative error)
    y_ref = _reference(x)
    err = jnp.max(jnp.abs(y - y_ref))
    assert bool(err < 5e-3), f"max abs err {err}"

    print("KERNEL_OK")
</pallas_src>

<mosaic_0001>
module attributes {stable_mosaic.version = 11 : i64} {
  func.func @_spectrogram_kernel(%arg0: i32, %arg1: i32, %arg2: memref<1x24x50xbf16, #tpu.memory_space<vmem>>, %arg3: memref<1x8x50xbf16, #tpu.memory_space<vmem>>, %arg4: memref<3x64x128xf32, #tpu.memory_space<vmem>>, %arg5: memref<1x24x64xf32, #tpu.memory_space<vmem>>, %arg6: memref<32x64xf32, #tpu.memory_space<vmem>>) attributes {dimension_semantics = [#tpu.dimension_semantics<parallel>, #tpu.dimension_semantics<parallel>], iteration_bounds = array<i64: 4, 1>, scalar_prefetch = 0 : i64, scratch_operands = 1 : i64, tpu.core_type = #tpu.core_type<tc>, window_params = [{transform_indices = @transform_0, window_bounds = array<i64: 1, 24, 50>}, {transform_indices = @transform_1, window_bounds = array<i64: 1, 8, 50>}, {pipeline_mode = #tpu.pipeline_mode<synchronous>, transform_indices = @transform_2, window_bounds = array<i64: 3, 64, 128>}, {transform_indices = @transform_3, window_bounds = array<i64: 1, 24, 64>}]} {
    %cst = arith.constant 0.000000e+00 : f32
    %0 = vector.broadcast %cst : f32 to vector<32x64xf32>
    %c0 = arith.constant 0 : index
    %c0_0 = arith.constant 0 : index
    %1 = vector.load %arg6[%c0, %c0_0] : memref<32x64xf32, #tpu.memory_space<vmem>>, vector<32x64xf32>
    tpu.vector_store %arg6[%c0, %c0_0], %0 {strides = array<i32>} : memref<32x64xf32, #tpu.memory_space<vmem>>, vector<32x64xf32>,
    %c0_1 = arith.constant 0 : index
    %c0_2 = arith.constant 0 : index
    %c0_3 = arith.constant 0 : index
    %2 = vector.load %arg2[%c0_1, %c0_2, %c0_3] : memref<1x24x50xbf16, #tpu.memory_space<vmem>>, vector<1x24x50xbf16>
    %3 = vector.shape_cast %2 : vector<1x24x50xbf16> to vector<24x50xbf16>
    %4 = arith.extf %3 : vector<24x50xbf16> to vector<24x50xf32>
    %c0_4 = arith.constant 0 : index
    %c0_5 = arith.constant 0 : index
    %5 = vector.load %arg6[%c0_4, %c0_5] : memref<32x64xf32, #tpu.memory_space<vmem>>, vector<24x50xf32>
    tpu.vector_store %arg6[%c0_4, %c0_5], %4 {strides = array<i32>} : memref<32x64xf32, #tpu.memory_space<vmem>>, vector<24x50xf32>,
    %c0_6 = arith.constant 0 : index
    %c0_7 = arith.constant 0 : index
    %c0_8 = arith.constant 0 : index
    %6 = vector.load %arg3[%c0_6, %c0_7, %c0_8] : memref<1x8x50xbf16, #tpu.memory_space<vmem>>, vector<1x8x50xbf16>
    %7 = vector.shape_cast %6 : vector<1x8x50xbf16> to vector<8x50xbf16>
    %8 = arith.extf %7 : vector<8x50xbf16> to vector<8x50xf32>
    %c24 = arith.constant 24 : index
    %c0_9 = arith.constant 0 : index
    %9 = vector.load %arg6[%c24, %c0_9] : memref<32x64xf32, #tpu.memory_space<vmem>>, vector<8x50xf32>
    tpu.vector_store %arg6[%c24, %c0_9], %8 {strides = array<i32>} : memref<32x64xf32, #tpu.memory_space<vmem>>, vector<8x50xf32>,
    %c0_10 = arith.constant 0 : index
    %c0_11 = arith.constant 0 : index
    %10 = vector.load %arg6[%c0_10, %c0_11] : memref<32x64xf32, #tpu.memory_space<vmem>>, vector<32x64xf32>
    %11 = vector.extract_strided_slice %10 {offsets = [0, 0], sizes = [24, 64], strides = [1, 1]} : vector<32x64xf32> to vector<24x64xf32>
    %c0_12 = arith.constant 0 : index
    %c0_13 = arith.constant 0 : index
    %c0_14 = arith.constant 0 : index
    %12 = vector.load %arg4[%c0_12, %c0_13, %c0_14] : memref<3x64x128xf32, #tpu.memory_space<vmem>>, vector<1x64x128xf32>
    %13 = vector.shape_cast %12 : vector<1x64x128xf32> to vector<64x128xf32>
    %cst_15 = arith.constant dense<0.000000e+00> : vector<24x128xf32>
    %14 = tpu.matmul %11, %13, %cst_15 {dimension_numbers = #tpu.dot_dimension_numbers<[1], [0], [0], [1], [0, 0, 1, 1], [], []>} : vector<24x64xf32>, vector<64x128xf32>, vector<24x128xf32> -> vector<24x128xf32>
    %15 = vector.extract_strided_slice %10 {offsets = [1, 0], sizes = [24, 64], strides = [1, 1]} : vector<32x64xf32> to vector<24x64xf32>
    %c1 = arith.constant 1 : index
    %c0_16 = arith.constant 0 : index
    %c0_17 = arith.constant 0 : index
    %16 = vector.load %arg4[%c1, %c0_16, %c0_17] : memref<3x64x128xf32, #tpu.memory_space<vmem>>, vector<1x64x128xf32>
    %17 = vector.shape_cast %16 : vector<1x64x128xf32> to vector<64x128xf32>
    %cst_18 = arith.constant dense<0.000000e+00> : vector<24x128xf32>
    %18 = tpu.matmul %15, %17, %cst_18 {dimension_numbers = #tpu.dot_dimension_numbers<[1], [0], [0], [1], [0, 0, 1, 1], [], []>} : vector<24x64xf32>, vector<64x128xf32>, vector<24x128xf32> -> vector<24x128xf32>
    %19 = arith.addf %14, %18 : vector<24x128xf32>
    %20 = vector.extract_strided_slice %10 {offsets = [2, 0], sizes = [24, 64], strides = [1, 1]} : vector<32x64xf32> to vector<24x64xf32>
    %c2 = arith.constant 2 : index
    %c0_19 = arith.constant 0 : index
    %c0_20 = arith.constant 0 : index
    %21 = vector.load %arg4[%c2, %c0_19, %c0_20] : memref<3x64x128xf32, #tpu.memory_space<vmem>>, vector<1x64x128xf32>
    %22 = vector.shape_cast %21 : vector<1x64x128xf32> to vector<64x128xf32>
    %cst_21 = arith.constant dense<0.000000e+00> : vector<24x128xf32>
    %23 = tpu.matmul %20, %22, %cst_21 {dimension_numbers = #tpu.dot_dimension_numbers<[1], [0], [0], [1], [0, 0, 1, 1], [], []>} : vector<24x64xf32>, vector<64x128xf32>, vector<24x128xf32> -> vector<24x128xf32>
    %24 = arith.addf %19, %23 : vector<24x128xf32>
    %25 = vector.extract_strided_slice %24 {offsets = [0, 0], sizes = [24, 64], strides = [1, 1]} : vector<24x128xf32> to vector<24x64xf32>
    %26 = vector.extract_strided_slice %24 {offsets = [0, 64], sizes = [24, 64], strides = [1, 1]} : vector<24x128xf32> to vector<24x64xf32>
    %27 = arith.mulf %25, %25 : vector<24x64xf32>
    %28 = arith.mulf %26, %26 : vector<24x64xf32>
    %29 = arith.addf %27, %28 : vector<24x64xf32>
    %30 = math.sqrt %29 : vector<24x64xf32>
    %cst_22 = arith.constant 1.000000e+01 : f32
    %31 = vector.broadcast %cst_22 : f32 to vector<24x64xf32>
    %32 = arith.minimumf %30, %31 : vector<24x64xf32>
    %c0_23 = arith.constant 0 : index
    %c0_24 = arith.constant 0 : index
    %c0_25 = arith.constant 0 : index
    %33 = vector.load %arg5[%c0_23, %c0_24, %c0_25] : memref<1x24x64xf32, #tpu.memory_space<vmem>>, vector<1x24x64xf32>
    %34 = vector.shape_cast %33 : vector<1x24x64xf32> to vector<24x64xf32>
    %35 = vector.shape_cast %32 : vector<24x64xf32> to vector<1x24x64xf32>
    tpu.vector_store %arg5[%c0_23, %c0_24, %c0_25], %35 {strides = array<i32>} : memref<1x24x64xf32, #tpu.memory_space<vmem>>, vector<1x24x64xf32>,
    return
  }
  func.func @transform_0(%arg0: i32, %arg1: i32) -> (i32, i32, i32) {
    %c0_i32 = arith.constant 0 : i32
    %c0_i32_0 = arith.constant 0 : i32
    return %arg0, %arg1, %c0_i32 : i32, i32, i32
  }
  func.func @transform_1(%arg0: i32, %arg1: i32) -> (i32, i32, i32) {
    %c1_i32 = arith.constant 1 : i32
    %0 = arith.addi %arg1, %c1_i32 : i32
    %c3_i32 = arith.constant 3 : i32
    %1 = arith.muli %0, %c3_i32 : i32
    %c0_i32 = arith.constant 0 : i32
    %c0_i32_0 = arith.constant 0 : i32
    return %arg0, %1, %c0_i32 : i32, i32, i32
  }
  func.func @transform_2(%arg0: i32, %arg1: i32) -> (i32, i32, i32) {
    %c0_i32 = arith.constant 0 : i32
    %c0_i32_0 = arith.constant 0 : i32
    %c0_i32_1 = arith.constant 0 : i32
    %c0_i32_2 = arith.constant 0 : i32
    return %c0_i32, %c0_i32_0, %c0_i32_1 : i32, i32, i32
  }
  func.func @transform_3(%arg0: i32, %arg1: i32) -> (i32, i32, i32) {
    %c0_i32 = arith.constant 0 : i32
    %c0_i32_0 = arith.constant 0 : i32
    return %arg0, %arg1, %c0_i32 : i32, i32, i32
  }
}

</mosaic_0001>

<bundles_post_ra>
// kernel: transform.1
= control target key start
LH: loop header
LB: loop body
LE: loop exit
PB: predicated region body
PF: predicated region fallthrough
CT: control target
= control target key end

     0   :  { %s717_s12 = smov 0   ;;  %s719_s13 = smov 0   ;;  %s856_s0 = inlined_call_operand.vmem [shape: bf16[4,48,50], index: 0, kind: input, shape index: {}, may-alias: {0,1}]   ;;  %s857_s1 = inlined_call_operand.vmem [shape: bf16[4,48,50], index: 1, kind: input, shape index: {}, may-alias: {0,1}]   ;;  %s858_s2 = inlined_call_operand.vmem [shape: f32[3,64,128], index: 2, kind: input, shape index: {}]   ;;  %s859_s3 = inlined_call_operand.vmem [shape: f32[4,24,64], index: 3, kind: output, shape index: {}]  }
   0x1   :  { %s721_s14 = smov 0  }
   0x2 LB: > { %s25_s15 = sadd.s32 1, %s689_s13  ;;  %p591_p0 = scmp.ge.s32.totalorder %s693_s14, 1  ;;  %s693_s14 = sphi %s721_s14, %s13_s14   ;;  %s689_s13 = sphi %s719_s13, %s861_s13   ;;  %s685_s12 = sphi %s717_s12, %s860_s12  }
   0x3   : > { %p27_p1 = scmp.ge.s32.totalorder %s25_s15, 4  ;;  %p181_p2 = scmp.lt.s32.totalorder %s693_s14, 5 }
   0x5   : > { %s863_s15 = smov (%p27_p1, %s25_s15), 0  ;;  %p182_p3 = pnand %p591_p0, %p181_p2 }
   0x6   : > { %p224_p4 = scmp.lt.s32.totalorder (!%p182_p3), %s685_s12, 3  ;;  %s696_s25 = smov (!%p182_p3), 64  }
   0x7   : > { %185 = sbr.rel (%p182_p3) target bundleno = 326 (0x146), region = 32 }
   0xc   : > { %v616_v0 = vld [vmem:[%s858_s2 + $0xb8] sm:$0xff]  ;;  %v615_v1 = vld [vmem:[%s858_s2 + $0xb0] sm:$0xff]  ;;  %vm255_vm0 = vcmask 523264   ;;  %v695_v5 = vmov 0.0   ;;  %v614_v6 = vld [vmem:[%s858_s2 + $0xa8] sm:$0xff]  ;;  %s865_s12 = smov (!%p224_p4, %s685_s12), 3 }
   0xd   : > { %v602_v2 = vld [vmem:[%s858_s2 + $0x78] sm:$0xff]  ;;  %401 = vmatpush.msra.mxu2 %v616_v0  ;;  %v601_v4 = vld [vmem:[%s858_s2 + $0x70] sm:$0xff]  ;;  %256 = vst.msk [vmem:[#allocation2] sm:$0xff] %vm255_vm0, %v695_v5  ;;  %v600_v8 = vld [vmem:[%s858_s2 + $0x68] sm:$0xff]  ;;  %s771_s11 = smul.u32 24, %s865_s12  ;;  %vm266_vm1 = vcmask 408576  }
   0xe   : > { %320 = vmatpush.msra.mxu0 %v602_v2  ;;  %v284_v3 = vld [vmem:[%s858_s2 + $0x38] sm:$0xff]  ;;  %628 = vmatpush.msra.mxu3 %v602_v2  ;;  %v283_v7 = vld [vmem:[%s858_s2 + $0x30] sm:$0xff]  ;;  %257 = vst.msk [vmem:[#allocation2 + $0x8] sm:$0xff] %vm255_vm0, %v695_v5  ;;  %v282_v9 = vld [vmem:[%s858_s2 + $0x28] sm:$0xff]  ;;  %vm379_vm2 = vcmask 1045504   ;;  %vm298_vm3 = vcmask 1046528  }
   0xf   : > { %352 = vmatpush.msra.mxu1 %v284_v3  ;;  %402 = vmatpush.msra.mxu2 %v615_v1  ;;  %258 = vst.msk [vmem:[#allocation2 + $0x10] sm:$0xff] %vm255_vm0, %v695_v5  ;;  %v613_v10 = vld [vmem:[%s858_s2 + $0xa0] sm:$0xff]  ;;  %v612_v13 = vld [vmem:[%s858_s2 + $0x98] sm:$0xff]  ;;  %s231_s23 = scalar_lea.vmem %s856_s0, %s771_s11  ;;  %s623_s24 = sadd.s32 12, %s771_s11  ;;  %v611_v15 = vld [vmem:[%s858_s2 + $0x90] sm:$0xff] }
  0x10   : > { %321 = vmatpush.msra.mxu0 %v601_v4  ;;  %629 = vmatpush.msra.mxu3 %v601_v4  ;;  %v599_v11 = vld [vmem:[%s858_s2 + $0x60] sm:$0xff]  ;;  %259 = vst.msk [vmem:[#allocation2 + $0x18] sm:$0xff] %vm255_vm0, %v695_v5  ;;  %v598_v14 = vld [vmem:[%s858_s2 + $0x58] sm:$0xff]  ;;  %s242_s4 = scalar_lea.vmem %s857_s1, %s623_s24  ;;  %v597_v18 = vld [vmem:[%s858_s2 + $0x50] sm:$0xff]  ;;  %s253_s28 = scalar_lea.vmem %s859_s3, %s771_s11 }
  0x11   : > { %353 = vmatpush.msra.mxu1 %v283_v7  ;;  %403 = vmatpush.msra.mxu2 %v614_v6  ;;  %v281_v12 = vld [vmem:[%s858_s2 + $0x20] sm:$0xff]  ;;  %v280_v16 = vld [vmem:[%s858_s2 + $0x18] sm:$0xff]  ;;  %v262_v21 = vld [vmem:[%s231_s23 + $0x8] sm:$0xf] }
  0x12   : > { %322 = vmatpush.msra.mxu0 %v600_v8  ;;  %630 = vmatpush.msra.mxu3 %v600_v8  ;;  %v625_v17 = vld [vmem:[%s231_s23] sm:$0xff]   ;;  %v279_v23 = vld [vmem:[%s858_s2 + $0x10] sm:$0xff]  ;;  %v265_v24 = vunpack.c.l.bf16 %v262_v21  ;;  %v610_v26 = vld [vmem:[%s858_s2 + $0x88] sm:$0xff] }
  0x13   : > { %354 = vmatpush.msra.mxu1 %v282_v9  ;;  %404 = vmatpush.msra.mxu2 %v613_v10  ;;  %v626_v19 = vunpack.c.l.bf16 %v625_v17  ;;  %v627_v20 = vunpack.c.h.bf16 %v625_v17  ;;  %v270_v22 = vld [vmem:[%s242_s4] sm:$0xf]  ;;  %v596_v27 = vld [vmem:[%s858_s2 + $0x48] sm:$0xff] }
  0x14   : > { %323 = vmatpush.msra.mxu0 %v599_v11  ;;  %631 = vmatpush.msra.mxu3 %v599_v11  ;;  %v271_v25 = vunpack.c.l.bf16 %v270_v22  ;;  %v278_v28 = vld [vmem:[%s858_s2 + $0x8] sm:$0xff]  ;;  %v609_v29 = vld [vmem:[%s858_s2 + $0x80] sm:$0xff]  ;;  %269 = vst.msk [vmem:[#allocation2 + $0x10] sm:$0xff] %vm266_vm1, %v265_v24 }
  0x15   : > { %355 = vmatpush.msra.mxu1 %v281_v12  ;;  %405 = vmatpush.msra.mxu2 %v612_v13  ;;  %267 = vst.msk [vmem:[#allocation2] sm:$0xff] %vm266_vm1, %v626_v19  ;;  %v595_v30 = vld [vmem:[%s858_s2 + $0x40] sm:$0xff] }
  0x16   : > { %324 = vmatpush.msra.mxu0 %v598_v14  ;;  %632 = vmatpush.msra.mxu3 %v598_v14  ;;  %268 = vst.msk [vmem:[#allocation2 + $0x8] sm:$0xff] %vm266_vm1, %v627_v20  ;;  %v277_v31 = vld [vmem:[%s858_s2] sm:$0xff] }
  0x17   : > { %356 = vmatpush.msra.mxu1 %v280_v16  ;;  %406 = vmatpush.msra.mxu2 %v611_v15  ;;  %272 = vst.msk [vmem:[#allocation2 + $0x18] sm:$0xff] %vm266_vm1, %v271_v25 }
  0x18   : > { %325 = vmatpush.msra.mxu0 %v597_v18  ;;  %633 = vmatpush.msra.mxu3 %v597_v18 }
  0x19   : > { %357 = vmatpush.msra.mxu1 %v279_v23  ;;  %407 = vmatpush.msra.mxu2 %v610_v26 }
  0x1a   : > { %326 = vmatpush.msra.mxu0 %v596_v27  ;;  %634 = vmatpush.msra.mxu3 %v596_v27 }
  0x1b   : > { %358 = vmatpush.msra.mxu1 %v278_v28  ;;  %408 = vmatpush.msra.mxu2 %v609_v29  ;;  %v275_v38 = vld [vmem:[#allocation2 + $0x10] sm:$0xff] }
  0x1c   : > { %327 = vmatpush.msra.mxu0 %v595_v30  ;;  %635 = vmatpush.msra.mxu3 %v595_v30  ;;  %v273_v32 = vld [vmem:[#allocation2] sm:$0xff]  ;;  %v302_v39 = vrot.slane %v275_v38, 1  ;;  %v383_v44 = vrot.slane %v275_v38, 2 }
  0x1d   : > { %359 = vmatpush.msra.mxu1 %v277_v31  ;;  %v274_v33 = vld [vmem:[#allocation2 + $0x8] sm:$0xff]  ;;  %v380_v34 = vrot.slane %v273_v32, 2  ;;  %v299_v35 = vrot.slane %v273_v32, 1 }
  0x1e   : > { %606 = vmatmul.msk.f32.vlgmr.msra.gmra.mxu1 %vm255_vm0, %v273_v32  ;;  %v381_v36 = vrot.slane %v274_v33, 2  ;;  %v300_v37 = vrot.slane %v274_v33, 1  ;;  %v276_v42 = vld [vmem:[#allocation2 + $0x18] sm:$0xff] }
  0x1f   : > { %v304_v45 = vrot.slane %v276_v42, 1  ;;  %v385_v48 = vrot.slane %v276_v42, 2 }
  0x20   : > { %v382_v40 = vsel %vm379_vm2, %v380_v34, %v381_v36  ;;  %v301_v41 = vsel %vm298_vm3, %v299_v35, %v300_v37  ;;  %v303_v43 = vsel %vm298_vm3, %v300_v37, %v302_v39  ;;  %v384_v46 = vsel %vm379_vm2, %v381_v36, %v383_v44 }
  0x21   : > { %617 = vmatmul.msk.f32.vlgmr.msra.gmra.mxu2 %vm255_vm0, %v382_v40  ;;  %603 = vmatmul.msk.f32.vlgmr.msra.gmra.mxu0 %vm255_vm0, %v301_v41  ;;  %v305_v47 = vsel %vm298_vm3, %v302_v39, %v304_v45  ;;  %v386_v49 = vsel %vm379_vm2, %v383_v44, %v385_v48 }
  0x22   : > { %604 = vmatmul.msk.f32.vlgmr.msra.gmra.mxu3 %vm255_vm0, %v303_v43 }
  0x26   : > { %607 = vmatmul.msk.f32.gmra.mxu1 %vm255_vm0, %v274_v33 }
  0x29   : > { %618 = vmatmul.msk.f32.gmra.mxu2 %vm255_vm0, %v384_v46 }
  0x2a   : > { %605 = vmatmul.msk.f32.gmra.mxu3 %vm255_vm0, %v305_v47 }
  0x2e   : > { %608 = vmatmul.msk.f32.gmra.mxu1 %vm255_vm0, %v275_v38 }
  0x31   : > { %619 = vmatmul.msk.f32.gmra.mxu2 %vm255_vm0, %v386_v49 }
  0x9b   : > { %v361_v50 = vpop.f32.mrf.mxu1 }
  0x9e   : > { %v329_v51 = vpop.f32.mrf.mxu0 }
  0x9f   : > { %v362_v52 = vadd.f32 %v361_v50, %v329_v51 }
  0xa3   : > { %v364_v54 = vpop.f32.mrf.mxu1 }
  0xa4   : > { %v410_v53 = vpop.f32.mrf.mxu2 }
  0xa5   : > { %v419_v55 = vadd.f32 %v410_v53, %v362_v52  ;;  %v332_v56 = vpop.f32.mrf.mxu3 }
  0xa6   : > { %v365_v58 = vadd.f32 %v364_v54, %v332_v56 }
  0xa7   : > { %v422_v57 = vmul.f32 %v419_v55, %v419_v55 }
  0xa9   : > { %428 = vrot.lane.b32.xlu0 %v422_v57, %s696_s25 }
  0xab   : > { %v367_v62 = vpop.f32.mrf.mxu1 }
  0xac   : > { %v413_v59 = vpop.f32.mrf.mxu2 }
  0xad   : > { %v420_v60 = vadd.f32 %v413_v59, %v365_v58  ;;  %v335_v61 = vpop.f32.mrf.mxu3 }
  0xae   : > { %v368_v0 = vadd.f32 %v367_v62, %v335_v61 }
  0xaf   : > { %v423_v63 = vmul.f32 %v420_v60, %v420_v60 }
  0xb1   : > { %430 = vrot.lane.b32.xlu0 %v423_v63, %s696_s25 }
  0xb4   : > { %v416_v1 = vpop.f32.mrf.mxu2 }
  0xb5   : > { %v421_v2 = vadd.f32 %v416_v1, %v368_v0 }
  0xb7   : > { %v424_v3 = vmul.f32 %v421_v2, %v421_v2 }
  0xb9   : > { %432 = vrot.lane.b32.xlu1 %v424_v3, %s696_s25 }
 0x11b   : > { %v429_v4 = vpop.permute.xlu0 %428 }
 0x11c   : > { %v437_v5 = vadd.f32 %v429_v4, %v422_v57 }
 0x11e   : > { %665 = vrsqrt.f32 %v437_v5  ;;  %vm447_vm4 = vcmp.eq.f32.partialorder %v437_v5, inf  ;;  %v450_v20 = vand.u32 2147483648, %v437_v5  ;;  %vm449_vm5 = vcmp.eq.f32.partialorder %v437_v5, 0.0 }
 0x123   : > { %v431_v6 = vpop.permute.xlu0 %430 }
 0x124   : > { %v666_v7 = vpop.eup %665  ;;  %v438_v8 = vadd.f32 %v431_v6, %v423_v63 }
 0x125   : > { %v441_v9 = vmul.f32 %v666_v7, %v437_v5 }
 0x126   : > { %667 = vrsqrt.f32 %v438_v8  ;;  %vm459_vm6 = vcmp.eq.f32.partialorder %v438_v8, inf  ;;  %v462_v31 = vand.u32 2147483648, %v438_v8  ;;  %vm461_vm7 = vcmp.eq.f32.partialorder %v438_v8, 0.0 }
 0x127   : > { %v442_v10 = vmul.f32 %v666_v7, %v441_v9 }
 0x129   : > { %v443_v11 = vmul.f32 0.5, %v442_v10 }
 0x12b   : > { %v444_v12 = vsub.f32 1.5, %v443_v11  ;;  %v433_v13 = vpop.permute.xlu1 %432 }
 0x12c   : > { %v668_v14 = vpop.eup %667  ;;  %v439_v15 = vadd.f32 %v433_v13, %v424_v3 }
 0x12d   : > { %v445_v16 = vmul.f32 %v666_v7, %v444_v12  ;;  %v453_v17 = vmul.f32 %v668_v14, %v438_v8 }
 0x12e   : > { %669 = vrsqrt.f32 %v439_v15  ;;  %vm471_vm8 = vcmp.eq.f32.partialorder %v439_v15, inf  ;;  %v474_v39 = vand.u32 2147483648, %v439_v15  ;;  %vm473_vm9 = vcmp.eq.f32.partialorder %v439_v15, 0.0 }
 0x12f   : > { %v446_v18 = vmul.f32 %v445_v16, %v437_v5  ;;  %v454_v19 = vmul.f32 %v668_v14, %v453_v17 }
 0x131   : > { %v448_v21 = vsel %vm447_vm4, %v437_v5, %v446_v18  ;;  %v455_v22 = vmul.f32 0.5, %v454_v19 }
 0x132   : > { %v451_v23 = vsel %vm449_vm5, %v450_v20, %v448_v21 }
 0x133   : > { %v476_v24 = vmin.f32 %v451_v23, 10.0  ;;  %v456_v25 = vsub.f32 1.5, %v455_v22 }
 0x134   : > { %v670_v26 = vpop.eup %669 }
 0x135   : > { %479 = vst.msk [vmem:[%s253_s28] sm:$0xff] %vm255_vm0, %v476_v24  ;;  %v457_v27 = vmul.f32 %v668_v14, %v456_v25  ;;  %v465_v28 = vmul.f32 %v670_v26, %v439_v15 }
 0x137   : > { %v458_v29 = vmul.f32 %v457_v27, %v438_v8  ;;  %v466_v30 = vmul.f32 %v670_v26, %v465_v28 }
 0x139   : > { %v460_v32 = vsel %vm459_vm6, %v438_v8, %v458_v29  ;;  %v467_v33 = vmul.f32 0.5, %v466_v30 }
 0x13a   : > { %v463_v34 = vsel %vm461_vm7, %v462_v31, %v460_v32 }
 0x13b   : > { %v477_v35 = vmin.f32 %v463_v34, 10.0  ;;  %v468_v36 = vsub.f32 1.5, %v467_v33 }
 0x13d   : > { %480 = vst.msk [vmem:[%s253_s28 + $0x8] sm:$0xff] %vm255_vm0, %v477_v35  ;;  %v469_v37 = vmul.f32 %v670_v26, %v468_v36 }
 0x13f   : > { %v470_v38 = vmul.f32 %v469_v37, %v439_v15 }
 0x141   : > { %v472_v40 = vsel %vm471_vm8, %v439_v15, %v470_v38 }
 0x142   : > { %v475_v41 = vsel %vm473_vm9, %v474_v39, %v472_v40 }
 0x143   : > { %v478_v42 = vmin.f32 %v475_v41, 10.0 }
 0x145   : > { %481 = vst.msk [vmem:[%s253_s28 + $0x10] sm:$0xff] %vm255_vm0, %v478_v42 }
 0x146 PF: > { %s13_s14 = sadd.s32 1, %s693_s14   ;;  %s860_s12 = smov %s689_s13 }
 0x147   : > { %p10_p5 = scmp.ge.s32.totalorder %s13_s14, 6   ;;  %s861_s13 = smov %s863_s15 }
 0x149   :  { %12 = sbr.rel (!%p10_p5) target bundleno = 2 (0x2), region = 67 }

</bundles_post_ra>
